<compile_context>
chip_gen: v6e
topology: v6e:2x2x1
jax: 0.10.0
libtpu: 0.0.40
codegen_flags: <defaults>
</compile_context>

<pallas_src>
import functools

import jax
import jax.numpy as jnp
from jax.experimental import pallas as pl
from jax.experimental.pallas import tpu as pltpu

LANES = 128
SUBLANES = 8
MAX_TM = 2048  # 2048 x 128 f32 = 1 MiB per input per buffer (4 MiB double-buffered)


def _round_up(x, m):
    return ((x + m - 1) // m) * m


def _simse_partial_kernel(rex_ref, x_ref, o_ref, *, tm, rows, nj, need_mask):
    c = pl.program_id(0)  # core-split index (parallel)
    j = pl.program_id(1)  # block index within split (arbitrary / reduction)

    # Output block (one (8,128) partial per split c) keeps the same block
    # index for every j -> stays resident in VMEM and acts as the accumulator.
    @pl.when(j == 0)
    def _():
        o_ref[...] = jnp.zeros_like(o_ref)

    diffs = x_ref[...].astype(jnp.float32) - rex_ref[...].astype(jnp.float32)

    if need_mask:
        # Rows past the true row count (ragged last block, or fully
        # out-of-range blocks of the last split) contain garbage -> zero them.
        # Pure VPU work (iota + cmp + select), free under the DMA bottleneck.
        blk = c * nj + j
        row_ids = blk * tm + jax.lax.broadcasted_iota(jnp.int32, (tm, LANES), 0)
        diffs = jnp.where(row_ids < rows, diffs, 0.0)

    # Reduce only along the leading vreg-slab axis: elementwise VPU adds into
    # the (8,128) accumulator; no per-step cross-lane (XLU) reduction.  The
    # reshape splits the sublane-major axis by a multiple of 8, so it stays
    # within (8,128) tiles and costs no data movement.
    o_ref[...] += diffs.reshape(tm // SUBLANES, SUBLANES, LANES).sum(axis=0)


def simse(re_x, x):
    """Pallas TPU implementation of SIMSE.forward(re_x, x)."""
    assert re_x.shape == x.shape, "re_x and x must have the same shape"
    n = x.size
    inv_n_sq = 1.0 / (float(n) ** 2)

    x_flat = jnp.ravel(x)
    rex_flat = jnp.ravel(re_x)

    # Lane-aligned bulk goes through the kernel; the (<128 element) tail is
    # summed in plain JAX so we never rewrite the whole array with jnp.pad.
    bulk_n = (n // LANES) * LANES
    if bulk_n == 0:
        # Tiny input: not worth a kernel launch.
        d = x_flat.astype(jnp.float32) - rex_flat.astype(jnp.float32)
        s = jnp.sum(d)
        return s * s * inv_n_sq

    rows = bulk_n // LANES
    x2d = x_flat[:bulk_n].reshape(rows, LANES)
    rex2d = rex_flat[:bulk_n].reshape(rows, LANES)

    tm = min(MAX_TM, _round_up(rows, SUBLANES))
    nblocks = pl.cdiv(rows, tm)
    nsplit = 2 if nblocks >= 2 else 1  # 2 TensorCores on v7x; harmless on v5e/v6e
    nj = pl.cdiv(nblocks, nsplit)
    need_mask = (nsplit * nj * tm) != rows

    if nsplit * nj == nblocks:
        def in_map(c, j):
            return (c * nj + j, 0)
    else:
        def in_map(c, j):
            # Clamp so out-of-range blocks of the last split stay in-bounds for
            # the DMA; their logical rows are >= `rows`, so the mask zeroes them.
            return (jnp.minimum(c * nj + j, nblocks - 1), 0)

    kernel = functools.partial(
        _simse_partial_kernel, tm=tm, rows=rows, nj=nj, need_mask=need_mask)

    partials = pl.pallas_call(
        kernel,
        out_shape=jax.ShapeDtypeStruct((nsplit, SUBLANES, LANES), jnp.float32),
        grid=(nsplit, nj),
        in_specs=[
            pl.BlockSpec((tm, LANES), in_map),
            pl.BlockSpec((tm, LANES), in_map),
        ],
        out_specs=pl.BlockSpec((None, SUBLANES, LANES), lambda c, j: (c, 0, 0)),
        compiler_params=pltpu.CompilerParams(
            dimension_semantics=("parallel", "arbitrary")),
    )(rex2d, x2d)

    # Single cross-lane reduction over the tiny partial array, plus the
    # (possibly empty) ragged tail; then square and scale like the PyTorch op.
    s = jnp.sum(partials)
    if bulk_n < n:
        s = s + jnp.sum(x_flat[bulk_n:].astype(jnp.float32)
                        - rex_flat[bulk_n:].astype(jnp.float32))
    return s * s * inv_n_sq


if __name__ == "__main__":
    key = jax.random.PRNGKey(0)
    k1, k2 = jax.random.split(key)
    # Small NCHW-like shapes consistent with a reconstruction-loss use-case.
    shape = (2, 4, 16, 16)
    re_x = jax.random.normal(k1, shape, dtype=jnp.float32)
    x = jax.random.normal(k2, shape, dtype=jnp.float32)

    result = simse(re_x, x)
    result = jax.block_until_ready(result)

    # Reference check in plain JAX (mirrors the PyTorch semantics).
    ref = jnp.sum(x - re_x) ** 2 / (x.size ** 2)
    assert jnp.allclose(result, ref, rtol=1e-5, atol=1e-6), (result, ref)

    print("KERNEL_OK")
</pallas_src>

<mosaic_0001>
module attributes {stable_mosaic.version = 11 : i64} {
  func.func @_simse_partial_kernel(%arg0: i32, %arg1: i32, %arg2: memref<16x128xf32, #tpu.memory_space<vmem>>, %arg3: memref<16x128xf32, #tpu.memory_space<vmem>>, %arg4: memref<1x8x128xf32, #tpu.memory_space<vmem>>) attributes {dimension_semantics = [#tpu.dimension_semantics<parallel>, #tpu.dimension_semantics<arbitrary>], iteration_bounds = array<i64: 1, 1>, scalar_prefetch = 0 : i64, scratch_operands = 0 : i64, tpu.core_type = #tpu.core_type<tc>, window_params = [{transform_indices = @transform_0, window_bounds = array<i64: 16, 128>}, {transform_indices = @transform_1, window_bounds = array<i64: 16, 128>}, {transform_indices = @transform_2, window_bounds = array<i64: 1, 8, 128>}]} {
    %c0_i32 = arith.constant 0 : i32
    %0 = arith.cmpi eq, %arg1, %c0_i32 : i32
    %1 = arith.extui %0 : i1 to i32
    %c0_i32_0 = arith.constant 0 : i32
    %2 = arith.cmpi ne, %1, %c0_i32_0 : i32
    scf.if %2 {
      %cst_10 = arith.constant 0.000000e+00 : f32
      %14 = vector.broadcast %cst_10 : f32 to vector<8x128xf32>
      %c0_11 = arith.constant 0 : index
      %c0_12 = arith.constant 0 : index
      %c0_13 = arith.constant 0 : index
      %15 = vector.load %arg4[%c0_11, %c0_12, %c0_13] : memref<1x8x128xf32, #tpu.memory_space<vmem>>, vector<1x8x128xf32>
      %16 = vector.shape_cast %15 : vector<1x8x128xf32> to vector<8x128xf32>
      %17 = vector.shape_cast %14 : vector<8x128xf32> to vector<1x8x128xf32>
      tpu.vector_store %arg4[%c0_11, %c0_12, %c0_13], %17 {strides = array<i32>} : memref<1x8x128xf32, #tpu.memory_space<vmem>>, vector<1x8x128xf32>,
    } else {
    }
    %c0 = arith.constant 0 : index
    %c0_1 = arith.constant 0 : index
    %3 = vector.load %arg3[%c0, %c0_1] : memref<16x128xf32, #tpu.memory_space<vmem>>, vector<16x128xf32>
    %c0_2 = arith.constant 0 : index
    %c0_3 = arith.constant 0 : index
    %4 = vector.load %arg2[%c0_2, %c0_3] : memref<16x128xf32, #tpu.memory_space<vmem>>, vector<16x128xf32>
    %5 = arith.subf %3, %4 : vector<16x128xf32>
    %c0_4 = arith.constant 0 : index
    %c0_5 = arith.constant 0 : index
    %c0_6 = arith.constant 0 : index
    %6 = vector.load %arg4[%c0_4, %c0_5, %c0_6] : memref<1x8x128xf32, #tpu.memory_space<vmem>>, vector<1x8x128xf32>
    %7 = vector.shape_cast %6 : vector<1x8x128xf32> to vector<8x128xf32>
    %8 = vector.shape_cast %5 : vector<16x128xf32> to vector<2x8x128xf32>
    %cst = arith.constant dense<0.000000e+00> : vector<8x128xf32>
    %9 = vector.multi_reduction <add>, %8, %cst [0] : vector<2x8x128xf32> to vector<8x128xf32>
    %10 = arith.addf %7, %9 : vector<8x128xf32>
    %c0_7 = arith.constant 0 : index
    %c0_8 = arith.constant 0 : index
    %c0_9 = arith.constant 0 : index
    %11 = vector.load %arg4[%c0_7, %c0_8, %c0_9] : memref<1x8x128xf32, #tpu.memory_space<vmem>>, vector<1x8x128xf32>
    %12 = vector.shape_cast %11 : vector<1x8x128xf32> to vector<8x128xf32>
    %13 = vector.shape_cast %10 : vector<8x128xf32> to vector<1x8x128xf32>
    tpu.vector_store %arg4[%c0_7, %c0_8, %c0_9], %13 {strides = array<i32>} : memref<1x8x128xf32, #tpu.memory_space<vmem>>, vector<1x8x128xf32>,
    return
  }
  func.func @transform_0(%arg0: i32, %arg1: i32) -> (i32, i32) {
    %c1_i32 = arith.constant 1 : i32
    %0 = arith.muli %arg0, %c1_i32 : i32
    %1 = arith.addi %0, %arg1 : i32
    %c0_i32 = arith.constant 0 : i32
    %c0_i32_0 = arith.constant 0 : i32
    return %1, %c0_i32 : i32, i32
  }
  func.func @transform_1(%arg0: i32, %arg1: i32) -> (i32, i32) {
    %c1_i32 = arith.constant 1 : i32
    %0 = arith.muli %arg0, %c1_i32 : i32
    %1 = arith.addi %0, %arg1 : i32
    %c0_i32 = arith.constant 0 : i32
    %c0_i32_0 = arith.constant 0 : i32
    return %1, %c0_i32 : i32, i32
  }
  func.func @transform_2(%arg0: i32, %arg1: i32) -> (i32, i32, i32) {
    %c0_i32 = arith.constant 0 : i32
    %c0_i32_0 = arith.constant 0 : i32
    %c0_i32_1 = arith.constant 0 : i32
    return %arg0, %c0_i32, %c0_i32_0 : i32, i32, i32
  }
}

</mosaic_0001>

<bundles_post_ra>
// kernel: tpu_custom_call.1
= control target key start
LH: loop header
LB: loop body
LE: loop exit
PB: predicated region body
PF: predicated region fallthrough
CT: control target
= control target key end

     0   :  { %7 = vsyncpa [#allocation3], 0  ;;  %s184_s0 = inlined_call_operand.hbm [shape: f32[16,128], index: 0, kind: input, shape index: {}]   ;;  %s185_s1 = inlined_call_operand.hbm [shape: f32[16,128], index: 1, kind: input, shape index: {}]   ;;  %s186_s2 = inlined_call_operand.hbm [shape: f32[1,8,128], index: 2, kind: output, shape index: {}]  }
   0x1   :  { %8 = vsyncpa [#allocation6], 0 }
   0x2   :  { %9 = vsyncpa [#allocation4], 0  ;;  %s155_s9 = smov [#allocation2]  }
   0x3   :  { %s19_s10 = sshll.u32 %s155_s9, 4  ;;  %s20_s10 = int_to_ptr.vmem [resolvable:$true] %s19_s10 }
   0x4   :  { %s97_s11 = scalar_lea.vmem %s20_s10, 256  ;;  %p102_p1 = scmp.lt.s32.totalorder %s20_s10, %s20_s10 }
   0x5   :  { %p98_p0 = scmp.ne.s32.totalorder %s20_s10, %s97_s11  ;;  %p103_p2 = scmp.lt.s32.totalorder %s97_s11, %s97_s11 }
   0x7   :  { %p104_p3 = por %p103_p2, %p102_p1 }
   0x9   :  { %p105_p4 = pnand %p104_p3, %p98_p0 }
   0xb   :  { %108 = shalt.err (!%p105_p4)
}
   0xc   :  { %s156_s12 = smov 128   ;;  %s157_s13 = smov 8  }
   0xd   :  { %25 = dma.hbm_to_vmem [thread:$0]  %s184_s0, 256, %s20_s10, [#allocation3], %s156_s12, %s156_s12, %s157_s13  }
   0xe   :  { %s158_s16 = smov [#allocation5]  }
   0xf   :  { %s35_s17 = sshll.u32 %s158_s16, 4  ;;  %s36_s17 = int_to_ptr.vmem [resolvable:$true] %s35_s17 }
  0x10   :  { %s117_s18 = scalar_lea.vmem %s36_s17, 256  ;;  %p122_p6 = scmp.lt.s32.totalorder %s36_s17, %s36_s17 }
  0x11   :  { %p118_p5 = scmp.ne.s32.totalorder %s36_s17, %s117_s18  ;;  %p123_p7 = scmp.lt.s32.totalorder %s117_s18, %s117_s18 }
  0x13   :  { %p124_p8 = por %p123_p7, %p122_p6 }
  0x15   :  { %p125_p9 = pnand %p124_p8, %p118_p5 }
  0x17   :  { %128 = shalt.err (!%p125_p9)
}
  0x18   :  { %41 = dma.hbm_to_vmem [thread:$0]  %s185_s1, 256, %s36_s17, [#allocation6], %s156_s12, %s156_s12, %s157_s13  }
  0x19   :  { %149 = dma.done.wait [#allocation3], 256  }
  0x1a   :  { %150 = vsyncadd [#allocation3], 4294967040 }
  0x1b   :  { %151 = dma.done.wait [#allocation6], 256  }
  0x1c   :  { %152 = vsyncadd [#allocation6], 4294967040  ;;  %v57_v0 = vld [vmem:[#allocation5] sm:$0xff]  ;;  %v58_v1 = vld [vmem:[#allocation5 + $0x8] sm:$0xff]  ;;  %s159_s0 = smov [#allocation7]  }
  0x1d   :  { %v59_v2 = vld [vmem:[#allocation2] sm:$0xff]  ;;  %v60_v3 = vld [vmem:[#allocation2 + $0x8] sm:$0xff]  ;;  %s73_s21 = sshll.u32 %s159_s0, 4  ;;  %s74_s21 = int_to_ptr.vmem [resolvable:$true] %s73_s21 }
  0x1e   :  { %v61_v4 = vsub.f32 %v57_v0, %v59_v2  ;;  %v62_v5 = vsub.f32 %v58_v1, %v60_v3  ;;  %s129_s22 = scalar_lea.vmem %s74_s21, 128  ;;  %p134_p11 = scmp.lt.s32.totalorder %s74_s21, %s74_s21 }
  0x1f   :  { %p130_p10 = scmp.ne.s32.totalorder %s74_s21, %s129_s22  ;;  %p135_p12 = scmp.lt.s32.totalorder %s129_s22, %s129_s22 }
  0x20   :  { %v64_v6 = vadd.f32 %v62_v5, %v61_v4 }
  0x21   :  { %p136_p13 = por %p135_p12, %p134_p11 }
  0x22   :  { %66 = vst [vmem:[#allocation7] sm:$0xff] %v64_v6 }
  0x23   :  { %p137_p0 = pnand %p136_p13, %p130_p10 }
  0x25   :  { %140 = shalt.err (!%p137_p0)
}
  0x26   :  { %76 = dma.vmem_to_hbm [thread:$0]  %s74_s21, 128, %s186_s2, [#allocation4]  }
  0x27   :  { %153 = dma.done.wait [#allocation4], 128  }
  0x28   :  { %154 = vsyncadd [#allocation4], 4294967168 }
  0x29   :  { %80 = vsyncpa [#allocation3], 1 }
  0x2a   :  { %81 = vsyncpa [#allocation6], 1 }
  0x2b   :  { %82 = vsyncpa [#allocation4], 1 }

</bundles_post_ra>
